<compile_context>
chip_gen: v7x
topology: tpu7x:2x2x1
jax: 0.10.0
libtpu: 0.0.40
codegen_flags: <defaults>
</compile_context>

<pallas_src>
import functools

import jax
import jax.numpy as jnp
from jax.experimental import pallas as pl
from jax.experimental.pallas import tpu as pltpu


# --------------------------------------------------------------------------- #
# Kernel
# --------------------------------------------------------------------------- #
def _bias_layer_kernel(params_ref, bounds_ref, x_ref, o_ref, *,
                       col_block_width, col_block_offset, compute_dtype):
    """One (tile_b, col_block_width) tile.

    Writes  where(col in [low, high), alpha * x + beta, x)  back to the tile.
    """
    alpha = params_ref[0].astype(compute_dtype)      # SMEM f32 -> compute dtype
    beta = params_ref[1].astype(compute_dtype)
    low = bounds_ref[0]                               # SMEM i32
    high = bounds_ref[1]

    x = x_ref[...]
    # Global column index of this block's first lane.
    col0 = (col_block_offset + pl.program_id(1)) * col_block_width
    # (1, W) iota row broadcast across the batch rows by jnp.where; avoids a
    # full-tile int32 temporary.
    col = col0 + jax.lax.broadcasted_iota(jnp.int32, (1, x.shape[-1]), 1)
    in_range = (col >= low) & (col < high)

    y = (alpha * x.astype(compute_dtype) + beta).astype(x.dtype)
    o_ref[...] = jnp.where(in_range, y, x)


# --------------------------------------------------------------------------- #
# Tiling / budget helpers
# --------------------------------------------------------------------------- #
def _sublane_rows(itemsize):
    # vreg sublane packing: 8 rows for 4-byte, 16 for 2-byte, 32 for 1-byte dtypes.
    return {4: 8, 2: 16, 1: 32}.get(itemsize, 8)


def _default_compute_dtype(x_dtype):
    if x_dtype == jnp.dtype(jnp.bfloat16):
        try:
            kind = jax.devices()[0].device_kind.lower()
        except Exception:
            kind = ""
        # v5-generation VPUs have no native bf16 math: keep f32 there.
        if "v5" in kind:
            return jnp.float32
        return jnp.bfloat16
    return jnp.float32


def _vmem_budget():
    """(vmem_limit_bytes, per-tile byte target) sized for the current chip."""
    try:
        cap = int(pltpu.get_tpu_info().vmem_capacity_bytes)
    except Exception:
        cap = 64 * 1024 * 1024                       # conservative (v7x-sized)
    # Scoped limit <= half of physical VMEM, capped at 64 MiB.
    vmem_limit = min(max(cap // 2, 16 * 1024 * 1024), 64 * 1024 * 1024)
    # 4 live buffers (in + out, double-buffered); keep the working set <= ~3/4
    # of the scoped limit and each tile in the measured 2-4 MiB sweet spot.
    tile_target = min((vmem_limit * 3 // 4) // 4, 4 * 1024 * 1024)
    return vmem_limit, tile_target


def _choose_tile_rows(batch, row_bytes, itemsize, byte_target, min_row_steps=1):
    """Largest sublane-aligned row tile whose bytes fit the per-tile target."""
    sub = _sublane_rows(itemsize)
    max_rows = max(byte_target // max(row_bytes, 1), 1)
    tile = min(batch, max_rows)
    if min_row_steps > 1 and batch >= min_row_steps * sub:
        tile = min(tile, -(-batch // min_row_steps))       # ceil(batch / steps)
    if tile >= sub:
        tile = (tile // sub) * sub
    elif tile < batch:
        tile = min(batch, 8)        # (8, .) legality floor; never whole-batch blowup
    # else: tile == batch (< sub rows) -> single full-batch block is legal.
    return max(tile, 1)


def _row_steps_wanted(batch, itemsize):
    """>=2 (ideally 4) row-tile steps so both v7x TensorCores get work."""
    sub = _sublane_rows(itemsize)
    for s in (4, 2):
        if batch >= s * sub:
            return s
    return 1


# --------------------------------------------------------------------------- #
# Wrapper
# --------------------------------------------------------------------------- #
def bias_layer_forward(x, alpha, beta, low_range, high_range, *,
                       donate_x=False, compute_dtype=None):
    """Pallas TPU implementation of BiasLayer.forward.

    ret = x.clone(); ret[:, low:high] = alpha * x[:, low:high] + beta

    x: (batch, num_classes) logits (f32 or bf16).
    alpha, beta: scalar parameters.
    low_range, high_range: class-range bounds (Python ints or traced scalars).
    donate_x: in-place update via input_output_aliases; with static int bounds
        the kernel additionally restricts itself to the 128-aligned column
        window covering [low, high), which is where the bandwidth saving comes
        from (aliasing alone does not reduce read+write traffic).
    """
    assert x.ndim == 2, "expected logits of shape (batch, num_classes)"
    batch, ncols = x.shape
    itemsize = jnp.dtype(x.dtype).itemsize

    if compute_dtype is None:
        compute_dtype = _default_compute_dtype(jnp.dtype(x.dtype))

    params = jnp.stack([jnp.asarray(alpha, jnp.float32).reshape(()),
                        jnp.asarray(beta, jnp.float32).reshape(())])
    bounds = jnp.stack([jnp.asarray(low_range, jnp.int32).reshape(()),
                        jnp.asarray(high_range, jnp.int32).reshape(())])

    vmem_limit, byte_target = _vmem_budget()

    static_bounds = isinstance(low_range, int) and isinstance(high_range, int)
    use_window = donate_x and static_bounds

    if use_window:
        low = max(int(low_range), 0)
        high = min(int(high_range), ncols)
        if high <= low:
            return x                                   # nothing to bias (in-place no-op)
        if ncols <= 128:
            col_w = ncols
        else:
            # 128-lane aligned column blocks; widen for wide windows so the
            # per-row DMA chunks stay fat without dragging many untouched cols.
            col_w = 128
            while (col_w < 1024 and (high - low) >= 4 * col_w
                   and ncols >= 2 * col_w):
                col_w *= 2
        lo_blk = low // col_w
        n_col_blocks = -(-high // col_w) - lo_blk
    else:
        sub = _sublane_rows(itemsize)
        if sub * ncols * itemsize <= byte_target:
            col_w = ncols                              # lane-dense full-width rows
        else:
            # One sublane group of full rows would blow the tile budget (very
            # large num_classes): tile the class axis in 128-lane multiples.
            col_w = max(((byte_target // (sub * itemsize)) // 128) * 128, 128)
        lo_blk = 0
        n_col_blocks = pl.cdiv(ncols, col_w)

    steps = _row_steps_wanted(batch, itemsize) if n_col_blocks == 1 else 1
    tile_b = _choose_tile_rows(batch, col_w * itemsize, itemsize, byte_target,
                               min_row_steps=steps)

    grid = (pl.cdiv(batch, tile_b), n_col_blocks)
    block_spec = pl.BlockSpec((tile_b, col_w), lambda i, j: (i, lo_blk + j))

    kernel = functools.partial(_bias_layer_kernel,
                               col_block_width=col_w,
                               col_block_offset=lo_blk,
                               compute_dtype=compute_dtype)

    extra = {}
    if donate_x:
        # Alias x (input index 2) with the output buffer: avoids allocating a
        # second (B, C) HBM array. Traffic only drops when combined with the
        # column-window restriction above.
        extra["input_output_aliases"] = {2: 0}

    # TODO(synk): for very large B*C with num_classes % 128 != 0, pad the class
    # axis to a multiple of 128 at the model/wrapper level so stores stay
    # unmasked (lane-dense); not worth the reshape cost at small logit sizes.
    return pl.pallas_call(
        kernel,
        out_shape=jax.ShapeDtypeStruct(x.shape, x.dtype),
        grid=grid,
        in_specs=[
            pl.BlockSpec(memory_space=pltpu.MemorySpace.SMEM),   # [alpha, beta]
            pl.BlockSpec(memory_space=pltpu.MemorySpace.SMEM),   # [low, high]
            block_spec,
        ],
        out_specs=block_spec,
        compiler_params=pltpu.CompilerParams(
            dimension_semantics=("parallel", "parallel"),
            vmem_limit_bytes=vmem_limit,
        ),
        **extra,
    )(params, bounds, x)


# --------------------------------------------------------------------------- #
# Demo / self-test
# --------------------------------------------------------------------------- #
if __name__ == "__main__":
    key = jax.random.PRNGKey(0)
    k1, k2 = jax.random.split(key)

    alpha = jnp.float32(1.5)
    beta = jnp.float32(-0.25)

    # Case 1: full clone path, f32 logits, lane-dense full-width row tiles,
    # multi-step row grid (pipelining + megacore split).
    B, C = 64, 120
    x = jax.random.normal(k1, (B, C), dtype=jnp.float32)
    low, high = 30, 90
    out = jax.block_until_ready(bias_layer_forward(x, alpha, beta, low, high))
    ref = x.at[:, low:high].set(alpha * x[:, low:high] + beta)
    assert out.shape == x.shape and out.dtype == x.dtype
    assert jnp.allclose(out, ref, atol=1e-6, rtol=1e-6), "f32 full-path mismatch"

    # Case 2: donated in-place path, bf16 logits. Only the 128-aligned column
    # window covering [300, 420) is read/written; columns outside it keep the
    # input bits exactly.
    B2, C2 = 32, 512
    x2 = jax.random.normal(k2, (B2, C2), dtype=jnp.bfloat16)
    low2, high2 = 300, 420
    out2 = jax.block_until_ready(
        bias_layer_forward(x2, alpha, beta, low2, high2, donate_x=True))
    ref2 = x2.at[:, low2:high2].set(
        (alpha * x2[:, low2:high2].astype(jnp.float32) + beta).astype(jnp.bfloat16))
    assert out2.shape == x2.shape and out2.dtype == x2.dtype
    assert bool(jnp.all(out2[:, :low2] == x2[:, :low2])), "out-of-range cols changed"
    assert bool(jnp.all(out2[:, high2:] == x2[:, high2:])), "out-of-range cols changed"
    # Kernel may compute the affine in bf16 on v6e/v7x -> allow bf16-level tolerance.
    assert jnp.allclose(out2.astype(jnp.float32), ref2.astype(jnp.float32),
                        atol=5e-2, rtol=5e-2), "bf16 window-path mismatch"

    print("KERNEL_OK")
</pallas_src>

<mosaic_0001>
module attributes {stable_mosaic.version = 11 : i64} {
  func.func @_bias_layer_kernel(%arg0: i32, %arg1: i32, %arg2: memref<2xf32, #tpu.memory_space<smem>>, %arg3: memref<2xi32, #tpu.memory_space<smem>>, %arg4: memref<16x120xf32, #tpu.memory_space<vmem>>, %arg5: memref<16x120xf32, #tpu.memory_space<vmem>>) attributes {dimension_semantics = [#tpu.dimension_semantics<parallel>, #tpu.dimension_semantics<parallel>], iteration_bounds = array<i64: 4, 1>, scalar_prefetch = 0 : i64, scratch_operands = 0 : i64, tpu.core_type = #tpu.core_type<tc>, window_params = [{transform_indices = @transform_0, window_bounds = array<i64: 2>}, {transform_indices = @transform_1, window_bounds = array<i64: 2>}, {transform_indices = @transform_2, window_bounds = array<i64: 16, 120>}, {transform_indices = @transform_3, window_bounds = array<i64: 16, 120>}]} {
    %c0 = arith.constant 0 : index
    %0 = memref.load %arg2[%c0] : memref<2xf32, #tpu.memory_space<smem>>
    %c1 = arith.constant 1 : index
    %1 = memref.load %arg2[%c1] : memref<2xf32, #tpu.memory_space<smem>>
    %c0_0 = arith.constant 0 : index
    %2 = memref.load %arg3[%c0_0] : memref<2xi32, #tpu.memory_space<smem>>
    %c1_1 = arith.constant 1 : index
    %3 = memref.load %arg3[%c1_1] : memref<2xi32, #tpu.memory_space<smem>>
    %c0_2 = arith.constant 0 : index
    %c0_3 = arith.constant 0 : index
    %4 = vector.load %arg4[%c0_2, %c0_3] : memref<16x120xf32, #tpu.memory_space<vmem>>, vector<16x120xf32>
    %c0_i32 = arith.constant 0 : i32
    %5 = arith.addi %c0_i32, %arg1 : i32
    %c120_i32 = arith.constant 120 : i32
    %6 = arith.muli %5, %c120_i32 : i32
    %7 = tpu.iota {dimensions = array<i32: 1>} : vector<1x120xi32>
    %8 = vector.broadcast %6 : i32 to vector<1x120xi32>
    %9 = arith.addi %8, %7 : vector<1x120xi32>
    %10 = vector.broadcast %2 : i32 to vector<1x120xi32>
    %11 = arith.cmpi sge, %9, %10 : vector<1x120xi32>
    %12 = vector.broadcast %3 : i32 to vector<1x120xi32>
    %13 = arith.cmpi slt, %9, %12 : vector<1x120xi32>
    %14 = arith.andi %11, %13 : vector<1x120xi1>
    %15 = vector.broadcast %0 : f32 to vector<16x120xf32>
    %16 = arith.mulf %15, %4 : vector<16x120xf32>
    %17 = vector.broadcast %1 : f32 to vector<16x120xf32>
    %18 = arith.addf %16, %17 : vector<16x120xf32>
    %19 = vector.shape_cast %14 : vector<1x120xi1> to vector<1x120xi1>
    %20 = vector.broadcast %19 : vector<1x120xi1> to vector<16x120xi1>
    %21 = arith.select %20, %18, %4 : vector<16x120xi1>, vector<16x120xf32>
    %c0_4 = arith.constant 0 : index
    %c0_5 = arith.constant 0 : index
    %22 = vector.load %arg5[%c0_4, %c0_5] : memref<16x120xf32, #tpu.memory_space<vmem>>, vector<16x120xf32>
    tpu.vector_store %arg5[%c0_4, %c0_5], %21 {strides = array<i32>} : memref<16x120xf32, #tpu.memory_space<vmem>>, vector<16x120xf32>,
    return
  }
  func.func @transform_0(%arg0: i32, %arg1: i32) -> i32 {
    %c0_i32 = arith.constant 0 : i32
    %c0_i32_0 = arith.constant 0 : i32
    return %c0_i32 : i32
  }
  func.func @transform_1(%arg0: i32, %arg1: i32) -> i32 {
    %c0_i32 = arith.constant 0 : i32
    %c0_i32_0 = arith.constant 0 : i32
    return %c0_i32 : i32
  }
  func.func @transform_2(%arg0: i32, %arg1: i32) -> (i32, i32) {
    %c0_i32 = arith.constant 0 : i32
    %0 = arith.addi %c0_i32, %arg1 : i32
    %c0_i32_0 = arith.constant 0 : i32
    return %arg0, %0 : i32, i32
  }
  func.func @transform_3(%arg0: i32, %arg1: i32) -> (i32, i32) {
    %c0_i32 = arith.constant 0 : i32
    %0 = arith.addi %c0_i32, %arg1 : i32
    %c0_i32_0 = arith.constant 0 : i32
    return %arg0, %0 : i32, i32
  }
}

</mosaic_0001>

<bundles_post_ra>
// kernel: tpu_custom_call.1
= control target key start
LH: loop header
LB: loop body
LE: loop exit
PB: predicated region body
PF: predicated region fallthrough
CT: control target
= control target key end

     0   :  { %8 = vsyncpa [#allocation5], 0  ;;  %s894_s0 = inlined_call_operand.hbm [shape: f32[2], index: 0, kind: input, shape index: {}]   ;;  %s895_s1 = inlined_call_operand.vmem [shape: s32[2], index: 1, kind: input, shape index: {}]   ;;  %s896_s2 = inlined_call_operand.hbm [shape: f32[64,120], index: 2, kind: input, shape index: {}]   ;;  %s897_s3 = inlined_call_operand.hbm [shape: f32[64,120], index: 3, kind: output, shape index: {}]  }
   0x1   :  { %9 = vsyncpa [#allocation6], 0 }
   0x2   :  { %10 = vsyncpa [#allocation3], 0 }
   0x3   :  { %12 = vsyncpa [#allocation3 + $0x1], 0 }
   0x4   :  { %13 = vsyncpa [#allocation4], 0 }
   0x5   :  { %15 = vsyncpa [#allocation4 + $0x1], 0  ;;  %s674_s12 = smov 0   ;;  %s676_s13 = smov 0  }
   0x6   :  { %s678_s14 = smov 0   ;;  %s680_s15 = smov 0  }
   0x7   :  { %s682_s16 = smov 0   ;;  %s684_s17 = smov 0  }
   0x8 LB: > { %s386_s18 = sadd.s32 4294967295, %s644_s17   ;;  %s387_s19 = sadd.s32 4294967294, %s644_s17   ;;  %s644_s17 = sphi %s684_s17, %s21_s17   ;;  %s640_s16 = sphi %s682_s16, %s917_s16   ;;  %s636_s15 = sphi %s680_s15, %s916_s15   ;;  %s632_s14 = sphi %s678_s14, %s915_s14   ;;  %s628_s13 = sphi %s676_s13, %s914_s13   ;;  %s624_s12 = sphi %s674_s12, %s913_s12  }
   0x9   : > { %s84_s20 = sadd.s32 1, %s632_s14  ;;  %p91_p0 = scmp.ne.s32.totalorder %s632_s14, %s628_s13 }
   0xa   : > { %p92_p1 = scmp.eq.s32.totalorder %s644_s17, 0  ;;  %p97_p2 = scmp.ne.s32.totalorder %s628_s13, %s624_s12 }
   0xb   : > { %p712_p3 = scmp.eq.s32.totalorder %s386_s18, 0  ;;  %p123_p4 = scmp.eq.s32.totalorder %s386_s18, 3 }
   0xc   : > { %p93_p5 = por %p92_p1, %p91_p0  ;;  %p129_p6 = scmp.eq.s32.totalorder %s387_s19, 3 }
   0xd   : > { %s902_s21 = scalar_select %p712_p3, 1, 0 }
   0xe   : > { %p718_p7 = por %p712_p3, %p97_p2  ;;  %p722_p8 = por %p123_p4, %p91_p0 }
   0xf   : > { %p726_p9 = por %p129_p6, %p97_p2  ;;  %p388_p10 = scmp.ge.s32.totalorder %s644_s17, 1 }
  0x10   : > { %s903_s22 = scalar_select %p718_p7, 1, 0 }
  0x11   : > { %s904_s23 = scalar_select %p722_p8, 1, 0 }
  0x12   : > { %s905_s24 = scalar_select %p726_p9, 1, 0 }
  0x13   : > { %p136_p11 = scmp.lt.s32.totalorder %s644_s17, 5  ;;  %p438_p13 = scmp.lt.s32.totalorder %s644_s17, 4 }
  0x14   : > { %s158_s28 = sshll.u32 %s895_s1, 4  ;;  %s169_s4 = sand.u32 1, %s632_s14   ;;  %s159_s28 = int_to_ptr.vmem [resolvable:$true] %s158_s28 }
  0x15   : > { %p732_p12 = pnand %p388_p10, %p136_p11  ;;  %p742_p1 = pnand %p438_p13, %p93_p5 }
  0x16   : > { %s33_s5 = sadd.s32 1, %s640_s16  ;;  %s496_s8 = scalar_lea.hbm %s894_s0, 16 }
  0x17   : > { %p421_p0 = pneg %p732_p12  ;;  %p497_p4 = scmp.ne.s32.totalorder %s894_s0, %s496_s8 }
  0x18   : > { %p503_p11 = scmp.lt.u32.totalorder %s496_s8, %s894_s0 }
  0x19   : > { %p748_p2 = pnand %p421_p0, %p712_p3 }
  0x1b   : > { %p498_p5 = pneg %p748_p2 }
  0x1d   : > { %p499_p6 = pnand %p498_p5, %p497_p4 }
  0x1f   : > { %p500_p10 = pneg %p499_p6 }
  0x21   : > { %p505_p13 = pnand %p503_p11, %p500_p10 }
  0x23   : > { %508 = shalt.err (!%p505_p13)
}
  0x24   : > { %s646_s19 = smov [#allocation2]   ;;  %s509_s6 = scalar_lea.vmem %s159_s28, 16 }
  0x25   : > { %424 = dma.hbm_to_smem (!%p748_p2), %s894_s0, 16, %s646_s19, [#allocation5]  }
  0x26   : > { %p510_p0 = scmp.ne.s32.totalorder %s159_s28, %s509_s6  ;;  %p517_p7 = scmp.lt.s32.totalorder %s159_s28, %s159_s28 }
  0x27   : > { %p518_p4 = scmp.lt.s32.totalorder %s509_s6, %s509_s6 }
  0x28   : > { %p512_p9 = pnand %p510_p0, %p498_p5 }
  0x29   : > { %p519_p6 = por %p518_p4, %p517_p7 }
  0x2a   : > { %p513_p8 = pneg %p512_p9 }
  0x2c   : > { %p520_p3 = pnand %p519_p6, %p513_p8 }
  0x2e   : > { %523 = shalt.err (!%p520_p3)
}
  0x2f   : > { %s647_s7 = smov [#allocation7]   ;;  %p35_p10 = scmp.ge.s32.totalorder %s33_s5, 4 }
  0x30   : > { %427 = dma.vmem_to_smem (!%p748_p2), %s159_s28, 16, %s647_s7, [#allocation6]  }
  0x31   : > { %s392_s8 = sshll.u32 %s169_s4, 4  ;;  %s407_s9 = sshll.u32 %s640_s16, 8 }
  0x32   : > { %s919_s5 = smov (%p35_p10, %s33_s5), 0  ;;  %s780_s30 = scalar_lea.hbm %s896_s2, %s407_s9 }
  0x33   : > { %s79_s18 = ssub.s32 %s640_s16, %s919_s5  ;;  %s173_s19 = scalar_lea.vmem [#allocation8], %s392_s8 }
  0x34   : > { %s181_s28 = sshll.u32 %s173_s19, 4  ;;  %p82_p3 = scmp.eq.s32.totalorder %s79_s18, 0  ;;  %s784_s28 = int_to_ptr.vmem [resolvable:$true] %s181_s28 }
  0x35   : > { %s793_s27 = scalar_lea.sflag [#allocation3], %s169_s4  ;;  %s524_s6 = scalar_lea.hbm %s780_s30, 256 }
  0x36   : > { %s789_s26 = scalar_select %p82_p3, %s632_s14, %s84_s20  }
  0x37   : > { %p525_p7 = scmp.ne.s32.totalorder %s780_s30, %s524_s6  ;;  %p526_p8 = pneg %p742_p1 }
  0x38   : > { %s529_s9 = scalar_lea.hbm %s896_s2, 1024  ;;  %p530_p5 = scmp.lt.u32.totalorder %s780_s30, %s896_s2 }
  0x39   : > { %p527_p9 = pnand %p526_p8, %p525_p7  ;;  %p531_p11 = scmp.lt.u32.totalorder %s529_s9, %s524_s6 }
  0x3a   : > { %p533_p0 = scmp.lt.u32.totalorder %s524_s6, %s780_s30 }
  0x3b   : > { %p528_p2 = pneg %p527_p9  ;;  %p532_p13 = por %p531_p11, %p530_p5 }
  0x3d   : > { %p534_p4 = por %p533_p0, %p532_p13 }
  0x3f   : > { %p535_p6 = pnand %p534_p4, %p528_p2 }
  0x41   : > { %538 = shalt.err (!%p535_p6)
}
  0x42   : > { %s539_s20 = scalar_lea.vmem %s784_s28, 256  ;;  %s648_s4 = smov [#allocation8]  }
  0x43   : > { %p540_p10 = scmp.ne.s32.totalorder %s784_s28, %s539_s20  ;;  %s544_s18 = sshll.u32 %s648_s4, 4  ;;  %s545_s18 = int_to_ptr.vmem [resolvable:$false] %s544_s18 }
  0x44   : > { %s546_s19 = scalar_lea.vmem %s545_s18, 512  ;;  %p547_p9 = scmp.lt.s32.totalorder %s784_s28, %s545_s18 }
  0x45   : > { %p542_p3 = pnand %p540_p10, %p526_p8  ;;  %p548_p5 = scmp.lt.s32.totalorder %s546_s19, %s539_s20 }
  0x47   : > { %p543_p7 = pneg %p542_p3  ;;  %p549_p11 = por %p548_p5, %p547_p9 }
  0x49   : > { %p550_p13 = pnand %p549_p11, %p543_p7 }
  0x4b   : > { %553 = shalt.err (!%p550_p13)
}
  0x4c   : > { %s649_s6 = smov 128   ;;  %s650_s7 = smov 8  }
  0x4d   : > { %431 = dma.hbm_to_vmem [thread:$0]  (!%p742_p1), %s780_s30, 256, %s784_s28, %s793_s27, %s649_s6, %s649_s6, %s650_s7  }
  0x4e   : > { %193 = sbr.rel (%p732_p12) target bundleno = 123 (0x7b), region = 32  ;;  %p909_p8 = scmp.ne.s32.totalorder (!%p732_p12), %s902_s21, 0 }
  0x55   : > { %607 = dma.done.wait (%p909_p8), [#allocation5], 16  }
  0x56   : > { %609 = vsyncadd (%p909_p8), [#allocation5], 4294967280 }
  0x57   : > { %611 = dma.done.wait (%p909_p8), [#allocation6], 16  }
  0x58   : > { %613 = vsyncadd (%p909_p8), [#allocation6], 4294967280  ;;  %s832_s8 = sand.u32 1, %s628_s13   ;;  %p910_p12 = scmp.ne.s32.totalorder %s903_s22, 0 }
  0x59   : > { %s398_s25 = sshll.u32 %s832_s8, 4  ;;  %s204_s29 = scalar_lea.sflag [#allocation3], %s832_s8 }
  0x5a   : > { %s207_s30 = scalar_lea.vmem [#allocation8], %s398_s25 }
  0x5b   : > { %615 = dma.done.wait (%p910_p12), %s204_s29, 256  }
  0x5c   : > { %617 = vsyncadd (%p910_p12), %s204_s29, 4294967040 }
  0x5d   : > { %212 = sfence }
  0x5e   : > { %s233_s28 = sld [smem:[#allocation2]]  ;;  %v240_v0 = vlaneseq  ;;  %s400_s21 = sld [smem:[#allocation2 + $0x1]]  ;;  %v237_v1 = vld [vmem:[%s207_s30] sm:$0xff]  ;;  %v238_v3 = vld [vmem:[%s207_s30 + $0x8] sm:$0xff]  ;;  %vm259_vm2 = vcmask 982016  }
  0x5f   : > { %s235_s27 = sld [smem:[#allocation7]]  ;;  %s401_s9 = sld [smem:[#allocation7 + $0x1]] }
  0x60   : > { %v241_v2 = vand.u32 127, %v240_v0  ;;  %s230_s10 = scalar_lea.vmem [#allocation9], %s398_s25  ;;  %s408_s22 = sshll.u32 %s636_s15, 8 }
  0x61   : > { %s277_s11 = sshll.u32 %s230_s10, 4  ;;  %s846_s18 = scalar_lea.hbm %s897_s3, %s408_s22  ;;  %s841_s11 = int_to_ptr.vmem [resolvable:$true] %s277_s11 }
  0x62   : > { %s263_s15 = scalar_lea.sflag [#allocation4], %s832_s8  ;;  %s554_s19 = scalar_lea.vmem %s841_s11, 256 }
  0x63   : > { %p555_p1 = scmp.ne.s32.totalorder %s841_s11, %s554_s19  ;;  %p911_p2 = scmp.ne.s32.totalorder %s904_s23, 0 }
  0x64   : > { %v249_v4 = vstv %s233_s28  ;;  %v252_v7 = vstv %s400_s21  ;;  %s651_s6 = smov [#allocation9]  }
  0x65   : > { %v244_v5 = vstv %s235_s27  ;;  %v250_v6 = vmul.f32 %v249_v4, %v237_v1  ;;  %v251_v8 = vmul.f32 %v249_v4, %v238_v3  ;;  %v246_v9 = vstv %s401_s9  ;;  %p556_p0 = pnand %p555_p1, %p911_p2  ;;  %s558_s7 = sshll.u32 %s651_s6, 4  ;;  %s559_s7 = int_to_ptr.vmem [resolvable:$false] %s558_s7 }
  0x66   : > { %vm245_vm0 = vcmp.ge.s32.totalorder %v241_v2, %v244_v5  ;;  %vm247_vm1 = vcmp.lt.s32.totalorder %v241_v2, %v246_v9  ;;  %s560_s25 = scalar_lea.vmem %s559_s7, 512  ;;  %p561_p6 = scmp.lt.s32.totalorder %s841_s11, %s559_s7 }
  0x67   : > { %v253_v10 = vadd.f32 %v252_v7, %v250_v6  ;;  %v254_v11 = vadd.f32 %v252_v7, %v251_v8  ;;  %vm248_vm3 = vmand %vm245_vm0, %vm247_vm1  ;;  %p557_p4 = pneg %p556_p0  ;;  %p562_p10 = scmp.lt.s32.totalorder %s560_s25, %s554_s19 }
  0x69   : > { %v257_v12 = vsel %vm248_vm3, %v253_v10, %v237_v1  ;;  %v258_v13 = vsel %vm248_vm3, %v254_v11, %v238_v3  ;;  %p563_p3 = por %p562_p10, %p561_p6 }
  0x6a   : > { %260 = vst.msk [vmem:[%s230_s10] sm:$0xff] %vm259_vm2, %v257_v12  ;;  %261 = vst.msk [vmem:[%s230_s10 + $0x8] sm:$0xff] %vm259_vm2, %v258_v13 }
  0x6b   : > { %p564_p7 = pnand %p563_p3, %p557_p4 }
  0x6d   : > { %567 = shalt.err (!%p564_p7)
}
  0x6e   : > { %s568_s29 = scalar_lea.hbm %s846_s18, 256  ;;  %s572_s21 = scalar_lea.hbm %s897_s3, 1024 }
  0x6f   : > { %p569_p9 = scmp.ne.s32.totalorder %s846_s18, %s568_s29  ;;  %p573_p13 = scmp.lt.u32.totalorder %s846_s18, %s897_s3 }
  0x70   : > { %p574_p8 = scmp.lt.u32.totalorder %s572_s21, %s568_s29  ;;  %p576_p1 = scmp.lt.u32.totalorder %s568_s29, %s846_s18 }
  0x71   : > { %p570_p5 = pnand %p569_p9, %p911_p2 }
  0x72   : > { %p575_p12 = por %p574_p8, %p573_p13 }
  0x73   : > { %p571_p11 = pneg %p570_p5 }
  0x74   : > { %p577_p0 = por %p576_p1, %p575_p12 }
  0x76   : > { %p578_p4 = pnand %p577_p0, %p571_p11 }
  0x78   : > { %581 = shalt.err (!%p578_p4)
}
  0x79   : > { %s652_s10 = smov 128   ;;  %s653_s22 = smov 8  }
  0x7a   : > { %419 = dma.vmem_to_hbm [thread:$0]  (%p911_p2), %s841_s11, 256, %s846_s18, %s263_s15, %s652_s10, %s652_s10, %s653_s22  }
  0x7b PF: > { %p441_p6 = scmp.ge.s32.totalorder %s644_s17, 2  ;;  %s292_s20 = sand.u32 1, %s624_s12  }
  0x7c   : > { %p912_p10 = scmp.ne.s32.totalorder %s905_s24, 0  ;;  %s293_s4 = scalar_lea.sflag [#allocation4], %s292_s20 }
  0x7e   : > { %p433_p3 = pnand %p441_p6, %p912_p10 }
  0x80   : > { %619 = dma.done.wait (!%p433_p3), %s293_s4, 256  }
  0x81   : > { %621 = vsyncadd (!%p433_p3), %s293_s4, 4294967040  ;;  %s21_s17 = sadd.s32 1, %s644_s17   ;;  %s913_s12 = smov %s628_s13 }
  0x82   : > { %p18_p7 = scmp.ge.s32.totalorder %s21_s17, 6   ;;  %s914_s13 = smov %s632_s14 }
  0x83   : > { %s915_s14 = smov %s789_s26  ;;  %s916_s15 = smov %s640_s16 }
  0x84   : > { %s917_s16 = smov %s919_s5  ;;  %20 = sbr.rel (!%p18_p7) target bundleno = 8 (0x8), region = 87 }
  0x8b   :  { %298 = vsyncpa [#allocation3], 1 }
  0x8c   :  { %300 = vsyncpa [#allocation3 + $0x1], 1 }
  0x8d   :  { %301 = vsyncpa [#allocation4], 1 }
  0x8e   :  { %303 = vsyncpa [#allocation4 + $0x1], 1 }
  0x8f   :  { %304 = vsyncpa [#allocation5], 1 }
  0x90   :  { %306 = vsyncpa [#allocation5 + $0x1], 1 }
  0x91   :  { %307 = vsyncpa [#allocation6], 1 }
  0x92   :  { %309 = vsyncpa [#allocation6 + $0x1], 1 }

</bundles_post_ra>
